<compile_context>
chip_gen: v6e
topology: v6e:2x2x1
jax: 0.10.0
libtpu: 0.0.40
codegen_flags: <defaults>
</compile_context>

<pallas_src>
import math

import jax
import jax.numpy as jnp
from jax.experimental import pallas as pl
from jax.experimental.pallas import tpu as pltpu


def _mlp_kernel(xT_ref, w1_ref, p_ref, b2_ref, outT_ref):
    # fc1, transposed: (n_hidden, n_in) @ (n_in, TB) -> (n_hidden, TB).
    # Batch on the lane axis => MXU N dimension is fully utilized, f32 accumulate.
    h = jnp.dot(w1_ref[...], xT_ref[...], preferred_element_type=jnp.float32)

    b1_col = p_ref[:, 0:1]                      # (n_hidden, 1), broadcast over lanes
    w2_col = p_ref[:, 1:2]                      # (n_hidden, 1)
    h = jnp.maximum(h + b1_col, 0.0)            # bias + ReLU on the VPU

    # fc2 (out_features == 1): VPU multiply + cross-sublane reduce (XLU) instead
    # of a second N=1 MXU round-trip.  Result stays lane-dense.
    o = jnp.sum(h * w2_col, axis=0, keepdims=True) + b2_ref[0]
    outT_ref[...] = o.astype(outT_ref.dtype)


def ddqn_final_layer_mlp(x, w1, b1, w2, b2):
    """x: (B, n_in); w1: (n_in, n_hidden) [== torch fc1.weight.T];
       b1: (n_hidden,); w2: (n_hidden, 1) [== torch fc2.weight.T]; b2: (1,).
       Returns (B, 1), matching DDQNFinalLayerMLP.forward."""
    B, n_in = x.shape
    n_hidden = w1.shape[1]

    # ---- batch tile on the lane axis -------------------------------------
    LANE = 128
    TB_TARGET = 512                    # lane-dense, keeps vreg pressure modest
    if B >= LANE:
        TB = min(TB_TARGET, (B // LANE) * LANE)   # multiple of 128
    else:
        TB = B                                    # full-extent block (exempt from the 128 rule)
    grid_b = pl.cdiv(B, TB)            # ragged last tile: reads padded, writes clipped

    # ---- transposed / packed parameter layout ----------------------------
    xT = x.T                                                     # (n_in, B)
    w1T = w1.T                                                   # (n_hidden, n_in)
    packed = jnp.concatenate(
        [b1.reshape(n_hidden, 1).astype(jnp.float32),
         w2.reshape(n_hidden, 1).astype(jnp.float32)], axis=1)   # (n_hidden, 2) = [b1 | w2]
    b2_s = b2.reshape(1).astype(jnp.float32)                     # scalar -> SMEM

    outT = pl.pallas_call(
        _mlp_kernel,
        out_shape=jax.ShapeDtypeStruct((1, B), x.dtype),
        grid_spec=pltpu.PrefetchScalarGridSpec(
            num_scalar_prefetch=0,
            grid=(grid_b,),
            in_specs=[
                # activations: one batch tile per grid step (auto double-buffered)
                pl.BlockSpec((n_in, TB), lambda i: (0, i)),
                # weights / packed biases: constant index -> VMEM-resident across steps
                pl.BlockSpec((n_hidden, n_in), lambda i: (0, 0)),
                pl.BlockSpec((n_hidden, 2), lambda i: (0, 0)),
                # fc2 bias scalar through SMEM (no padded VMEM tile / extra vector DMA)
                pl.BlockSpec(memory_space=pltpu.MemorySpace.SMEM),
            ],
            out_specs=pl.BlockSpec((1, TB), lambda i: (0, i)),
        ),
        compiler_params=pltpu.CompilerParams(
            # independent batch tiles -> shard across TensorCores on v7x
            dimension_semantics=("parallel",),
        ),
    )(xT, w1T, packed, b2_s)

    return outT.T                                                # (B, 1)


def init_params(key, n_in, n_hidden, dtype=jnp.float32):
    """Deterministic init mimicking torch.nn.Linear default (U[-1/sqrt(fan_in), +])."""
    k1, k2, k3, k4 = jax.random.split(key, 4)
    bound1 = 1.0 / math.sqrt(n_in)
    bound2 = 1.0 / math.sqrt(n_hidden)
    w1 = jax.random.uniform(k1, (n_in, n_hidden), dtype, -bound1, bound1)
    b1 = jax.random.uniform(k2, (n_hidden,), dtype, -bound1, bound1)
    w2 = jax.random.uniform(k3, (n_hidden, 1), dtype, -bound2, bound2)
    b2 = jax.random.uniform(k4, (1,), dtype, -bound2, bound2)
    return w1, b1, w2, b2


def _reference(x, w1, b1, w2, b2):
    return jnp.maximum(x @ w1 + b1, 0.0) @ w2 + b2


if __name__ == "__main__":
    key = jax.random.PRNGKey(0)
    kx, kp, kx2 = jax.random.split(key, 3)

    n_in, n_hidden = 16, 32
    w1, b1, w2, b2 = init_params(kp, n_in, n_hidden)

    # Small batch: single full-extent tile (TB == B == 2).
    x_small = jax.random.normal(kx, (2, n_in), jnp.float32)
    out_small = jax.block_until_ready(ddqn_final_layer_mlp(x_small, w1, b1, w2, b2))
    ref_small = _reference(x_small, w1, b1, w2, b2)
    assert out_small.shape == (2, 1)
    assert jnp.allclose(out_small, ref_small, atol=1e-5, rtol=1e-5)

    # Larger batch: exercises the tiled batch grid + ragged last tile
    # (B=300 -> TB=256, grid=2, last tile has 44 valid lanes).
    x_big = jax.random.normal(kx2, (300, n_in), jnp.float32)
    out_big = jax.block_until_ready(ddqn_final_layer_mlp(x_big, w1, b1, w2, b2))
    ref_big = _reference(x_big, w1, b1, w2, b2)
    assert out_big.shape == (300, 1)
    assert jnp.allclose(out_big, ref_big, atol=1e-5, rtol=1e-5)

    print("KERNEL_OK")
</pallas_src>

<mosaic_0001>
module attributes {stable_mosaic.version = 11 : i64} {
  func.func @_mlp_kernel(%arg0: i32, %arg1: memref<16x2xf32, #tpu.memory_space<vmem>>, %arg2: memref<32x16xf32, #tpu.memory_space<vmem>>, %arg3: memref<32x2xf32, #tpu.memory_space<vmem>>, %arg4: memref<1xf32, #tpu.memory_space<smem>>, %arg5: memref<1x2xf32, #tpu.memory_space<vmem>>) attributes {dimension_semantics = [#tpu.dimension_semantics<parallel>], iteration_bounds = array<i64: 1>, scalar_prefetch = 0 : i64, scratch_operands = 0 : i64, tpu.core_type = #tpu.core_type<tc>, window_params = [{transform_indices = @transform_0, window_bounds = array<i64: 16, 2>}, {pipeline_mode = #tpu.pipeline_mode<synchronous>, transform_indices = @transform_1, window_bounds = array<i64: 32, 16>}, {pipeline_mode = #tpu.pipeline_mode<synchronous>, transform_indices = @transform_2, window_bounds = array<i64: 32, 2>}, {transform_indices = @transform_3, window_bounds = array<i64: 1>}, {transform_indices = @transform_4, window_bounds = array<i64: 1, 2>}]} {
    %c0 = arith.constant 0 : index
    %c0_0 = arith.constant 0 : index
    %0 = vector.load %arg2[%c0, %c0_0] : memref<32x16xf32, #tpu.memory_space<vmem>>, vector<32x16xf32>
    %c0_1 = arith.constant 0 : index
    %c0_2 = arith.constant 0 : index
    %1 = vector.load %arg1[%c0_1, %c0_2] : memref<16x2xf32, #tpu.memory_space<vmem>>, vector<16x2xf32>
    %cst = arith.constant dense<0.000000e+00> : vector<32x2xf32>
    %2 = tpu.matmul %0, %1, %cst {dimension_numbers = #tpu.dot_dimension_numbers<[1], [0], [0], [1], [0, 0, 1, 1], [], []>} : vector<32x16xf32>, vector<16x2xf32>, vector<32x2xf32> -> vector<32x2xf32>
    %c0_3 = arith.constant 0 : index
    %c0_4 = arith.constant 0 : index
    %3 = vector.load %arg3[%c0_3, %c0_4] : memref<32x2xf32, #tpu.memory_space<vmem>>, vector<32x1xf32>
    %c0_5 = arith.constant 0 : index
    %c1 = arith.constant 1 : index
    %4 = vector.load %arg3[%c0_5, %c1] : memref<32x2xf32, #tpu.memory_space<vmem>>, vector<32x1xf32>
    %5 = vector.broadcast %3 : vector<32x1xf32> to vector<32x2xf32>
    %6 = arith.addf %2, %5 : vector<32x2xf32>
    %cst_6 = arith.constant 0.000000e+00 : f32
    %7 = vector.broadcast %cst_6 : f32 to vector<32x2xf32>
    %8 = arith.maximumf %6, %7 : vector<32x2xf32>
    %9 = vector.broadcast %4 : vector<32x1xf32> to vector<32x2xf32>
    %10 = arith.mulf %8, %9 : vector<32x2xf32>
    %cst_7 = arith.constant dense<0.000000e+00> : vector<2xf32>
    %11 = vector.multi_reduction <add>, %10, %cst_7 [0] : vector<32x2xf32> to vector<2xf32>
    %12 = vector.shape_cast %11 : vector<2xf32> to vector<1x2xf32>
    %c0_8 = arith.constant 0 : index
    %13 = memref.load %arg4[%c0_8] : memref<1xf32, #tpu.memory_space<smem>>
    %14 = vector.broadcast %13 : f32 to vector<1x2xf32>
    %15 = arith.addf %12, %14 : vector<1x2xf32>
    %c0_9 = arith.constant 0 : index
    %c0_10 = arith.constant 0 : index
    %16 = vector.load %arg5[%c0_9, %c0_10] : memref<1x2xf32, #tpu.memory_space<vmem>>, vector<1x2xf32>
    tpu.vector_store %arg5[%c0_9, %c0_10], %15 {strides = array<i32>} : memref<1x2xf32, #tpu.memory_space<vmem>>, vector<1x2xf32>,
    return
  }
  func.func @transform_0(%arg0: i32) -> (i32, i32) {
    %c0_i32 = arith.constant 0 : i32
    %c0_i32_0 = arith.constant 0 : i32
    return %c0_i32, %arg0 : i32, i32
  }
  func.func @transform_1(%arg0: i32) -> (i32, i32) {
    %c0_i32 = arith.constant 0 : i32
    %c0_i32_0 = arith.constant 0 : i32
    %c0_i32_1 = arith.constant 0 : i32
    return %c0_i32, %c0_i32_0 : i32, i32
  }
  func.func @transform_2(%arg0: i32) -> (i32, i32) {
    %c0_i32 = arith.constant 0 : i32
    %c0_i32_0 = arith.constant 0 : i32
    %c0_i32_1 = arith.constant 0 : i32
    return %c0_i32, %c0_i32_0 : i32, i32
  }
  func.func @transform_3(%arg0: i32) -> i32 {
    %c0_i32 = arith.constant 0 : i32
    %c0_i32_0 = arith.constant 0 : i32
    return %c0_i32 : i32
  }
  func.func @transform_4(%arg0: i32) -> (i32, i32) {
    %c0_i32 = arith.constant 0 : i32
    %c0_i32_0 = arith.constant 0 : i32
    return %c0_i32, %arg0 : i32, i32
  }
}

</mosaic_0001>

<bundles_post_ra>
// kernel: tpu_custom_call.1
= control target key start
LH: loop header
LB: loop body
LE: loop exit
PB: predicated region body
PF: predicated region fallthrough
CT: control target
= control target key end

     0   :  { %vm49_vm0 = vcmask 130048   ;;  %s321_s0 = inlined_call_operand.vmem [shape: f32[16,2], index: 0, kind: input, shape index: {}]   ;;  %s322_s1 = inlined_call_operand.vmem [shape: f32[32,16], index: 1, kind: input, shape index: {}]   ;;  %s323_s2 = inlined_call_operand.vmem [shape: f32[32,2], index: 2, kind: input, shape index: {}]   ;;  %s324_s3 = inlined_call_operand.<no memory space> [shape: f32[1], index: 3, kind: input, shape index: {}]   ;;  %s325_s4 = inlined_call_operand.hbm [shape: f32[1,2], index: 4, kind: output, shape index: {}]  }
   0x1   :  { %v24_v0 = vld [vmem:[%s321_s0 + $0x8] sm:$0xff]  ;;  %v23_v1 = vld [vmem:[%s321_s0] sm:$0xff]  ;;  %v21_v3 = vld [vmem:[%s322_s1 + $0x10] sm:$0xff] }
   0x2   :  { %214 = vmatprep.subr.mxu0 %v24_v0  ;;  %224 = vmatprep.subr.mxu1 %v24_v0  ;;  %v19_v2 = vld [vmem:[%s322_s1] sm:$0xff]  ;;  %v20_v4 = vld [vmem:[%s322_s1 + $0x8] sm:$0xff]  ;;  %v22_v5 = vld [vmem:[%s322_s1 + $0x18] sm:$0xff] }
   0x3   :  { %215 = vmatpush3.msra.mxu0 %v24_v0  ;;  %226 = vmatpush3.msra.mxu1 %v24_v0 }
   0x4   :  { %216 = vmatprep.subr.mxu0 %v23_v1  ;;  %225 = vmatprep.subr.mxu1 %v23_v1 }
   0x5   :  { %10 = vsyncpa [#allocation4], 0  ;;  %217 = vmatpush3.msra.mxu0 %v23_v1  ;;  %227 = vmatpush3.msra.mxu1 %v23_v1  ;;  %v27_v6 = vld [vmem:[%s323_s2 + $0x10] sm:$0xff]  ;;  %v25_v7 = vld [vmem:[%s323_s2] sm:$0xff]  ;;  %v257_v8 = vmov 0   ;;  %v258_v11 = vmov 1   ;;  %v186_v48 = vstv %s324_s3 }
   0x6   :  { %218 = vmatprep.mubr.msk.f32.mxu0 %vm49_vm0, %v19_v2  ;;  %221 = vmatprep.mubr.msk.f32.mxu1 %vm49_vm0, %v21_v3  ;;  %v28_v9 = vld [vmem:[%s323_s2 + $0x18] sm:$0xff]  ;;  %v26_v10 = vld [vmem:[%s323_s2 + $0x8] sm:$0xff]  ;;  %vm171_vm1 = vcmask 15360   ;;  %s259_s8 = smov [#allocation3]   ;;  %vm188_vm2 = vcmask 8192  }
   0x7   :  { %219 = vmatmul.mubr.msk.f32.vlgmr.msra.gmra.mxu0 %vm49_vm0, %v20_v4  ;;  %222 = vmatmul.mubr.msk.f32.vlgmr.msra.gmra.mxu1 %vm49_vm0, %v22_v5  ;;  %s196_s9 = sshll.u32 %s259_s8, 4  ;;  %s197_s9 = int_to_ptr.vmem [resolvable:$true] %s196_s9 }
   0x8   :  { %232 = vset.pattern.permute.xlu1 %v257_v8  ;;  %231 = vset.pattern.permute.xlu0 %v257_v8  ;;  %s235_s10 = scalar_lea.vmem %s197_s9, 16  ;;  %s239_s11 = scalar_lea.vmem %s197_s9, 32 }
   0x9   :  { %41 = vperm.xlu1 %232, %v27_v6   ;;  %31 = vperm.xlu0 %231, %v25_v7   ;;  %p236_p0 = scmp.ne.s32.totalorder %s197_s9, %s235_s10  ;;  %p240_p1 = scmp.lt.s32.totalorder %s197_s9, %s197_s9 }
   0xa   :  { %p241_p2 = scmp.lt.s32.totalorder %s239_s11, %s235_s10 }
   0xc   :  { %p242_p3 = por %p241_p2, %p240_p1 }
   0xd   :  { %46 = vperm.xlu1 %232, %v28_v9   ;;  %36 = vperm.xlu0 %231, %v26_v10  }
   0xe   :  { %p243_p4 = pnand %p242_p3, %p236_p0 }
  0x11   :  { %234 = vset.pattern.permute.xlu1 %v258_v11  ;;  %233 = vset.pattern.permute.xlu0 %v258_v11 }
  0x12   :  { %156 = vperm.xlu1 %234, %v26_v10   ;;  %152 = vperm.xlu0 %233, %v25_v7  }
  0x16   :  { %160 = vperm.xlu1 %234, %v27_v6   ;;  %164 = vperm.xlu0 %233, %v28_v9  }
  0x84   :  { %v42_v12 = vpop.permute.xlu1 %41  ;;  %v32_v13 = vpop.permute.xlu0 %31 }
  0x88   :  { %v47_v14 = vpop.permute.xlu1 %46  ;;  %v37_v15 = vpop.permute.xlu0 %36 }
  0x8d   :  { %v157_v16 = vpop.permute.xlu1 %156  ;;  %v153_v17 = vpop.permute.xlu0 %152 }
  0x91   :  { %v161_v31 = vpop.permute.xlu1 %160  ;;  %v165_v32 = vpop.permute.xlu0 %164 }
  0xc7   :  { %v220_v18 = vpop.f32.mrf.mxu0  ;;  %v223_v19 = vpop.f32.mrf.mxu1 }
  0xc8   :  { %v134_v20 = vadd.f32 %v220_v18, %v37_v15  ;;  %v144_v21 = vadd.f32 %v223_v19, %v47_v14 }
  0xc9   :  { %v128_v22 = vpop.f32.mrf.mxu0  ;;  %v138_v23 = vpop.f32.mrf.mxu1 }
  0xca   :  { %v148_v24 = vmax.f32 %v134_v20, 0.0  ;;  %v129_v25 = vadd.f32 %v128_v22, %v32_v13  ;;  %v139_v26 = vadd.f32 %v138_v23, %v42_v12  ;;  %v150_v28 = vmax.f32 %v144_v21, 0.0 }
  0xcc   :  { %v168_v27 = vmul.f32 %v157_v16, %v148_v24  ;;  %v147_v29 = vmax.f32 %v129_v25, 0.0  ;;  %v149_v30 = vmax.f32 %v139_v26, 0.0  ;;  %v170_v37 = vmul.f32 %v165_v32, %v150_v28 }
  0xce   :  { %v167_v33 = vmul.f32 %v153_v17, %v147_v29  ;;  %v169_v34 = vmul.f32 %v161_v31, %v149_v30  ;;  %v173_v35 = vsel %vm171_vm1, %v168_v27, 0.0  ;;  %v177_v41 = vsel %vm171_vm1, %v170_v37, 0.0 }
  0xd0   :  { %v172_v36 = vsel %vm171_vm1, %v167_v33, 0.0  ;;  %v175_v39 = vsel %vm171_vm1, %v169_v34, 0.0 }
  0xd1   :  { %v174_v38 = vadd.f32 %v173_v35, %v172_v36 }
  0xd3   :  { %v176_v40 = vadd.f32 %v175_v39, %v174_v38 }
  0xd5   :  { %v178_v42 = vadd.f32 %v177_v41, %v176_v40 }
  0xd7   :  { %v179_v43 = vrot.slane %v178_v42, 4 }
  0xd9   :  { %v180_v44 = vadd.f32 %v179_v43, %v178_v42 }
  0xdb   :  { %v181_v45 = vrot.slane %v180_v44, 2 }
  0xdd   :  { %v182_v46 = vadd.f32 %v181_v45, %v180_v44 }
  0xdf   :  { %v183_v47 = vrot.slane %v182_v46, 1 }
  0xe1   :  { %v184_v49 = vadd.f32 %v183_v47, %v182_v46 }
  0xe3   :  { %v187_v50 = vadd.f32 %v186_v48, %v184_v49 }
  0xe5   :  { %189 = vst.msk [vmem:[#allocation3] sm:$0x1] %vm188_vm2, %v187_v50 }
  0xe6   :  { %246 = shalt.err (!%p243_p4)
}
  0xe7   :  { %199 = dma.vmem_to_hbm [thread:$0]  %s197_s9, 16, %s325_s4, [#allocation4]  }
  0xe8   :  { %255 = dma.done.wait [#allocation4], 16  }
  0xe9   :  { %256 = vsyncadd [#allocation4], 4294967280 }
  0xea   :  { %203 = vsyncpa [#allocation4], 1 }

</bundles_post_ra>
